<compile_context>
chip_gen: v7x
topology: tpu7x:2x2x1
jax: 0.10.0
libtpu: 0.0.40
codegen_flags: <defaults>
</compile_context>

<pallas_src>
import jax
import jax.numpy as jnp
from jax.experimental import pallas as pl
from jax.experimental.pallas import tpu as pltpu

_LANE = 128
_SUBLANE = 8


def _round_up(x, m):
    return ((x + m - 1) // m) * m


def _round_up_feature(d):
    """Pad a feature dim to a lane multiple; prefer a 256 multiple (v6e/v7x
    MXUs are 2x256^2) when that costs <= 1/3 extra over the 128 multiple."""
    p128 = _round_up(d, 128)
    p256 = _round_up(d, 256)
    return p256 if p256 * 3 <= p128 * 4 else p128


def _vmem_budget_bytes():
    """Per-kernel VMEM budget: 3/4 of real capacity when queryable
    (128 MiB v5e/v6e, 64 MiB/TC v7x), conservative v7x-safe default otherwise."""
    try:
        info = pltpu.get_tpu_info()
        cap = getattr(info, "vmem_capacity_bytes", None)
        if cap:
            return int(cap) * 3 // 4
    except Exception:
        pass
    return 48 * 1024 * 1024


def _weight_tile_bytes(d_in_p, th, d_out_p):
    # bf16 weight tiles + f32 bias tile, double-buffered by the pipeline.
    return 2 * (2 * (d_in_p * th + th * d_out_p) + 4 * th + 4 * d_out_p)


def _activation_tile_bytes(tb, d_in_p, th, d_out_p, out_itemsize):
    return (2 * tb * d_in_p * 2                 # double-buffered bf16 x tiles
            + 2 * tb * d_out_p * out_itemsize   # double-buffered out tiles
            + tb * d_out_p * 4                  # f32 accumulator scratch
            + tb * th * 6)                      # f32 h + its bf16 copy (temps)


def mlp_kernel(x_ref, w1_ref, b1_ref, w2_ref, b2_ref, o_ref, acc_ref):
    """One (batch tile, hidden tile) step.

    relu(x @ W1 + b1) @ W2 is an exact sum over hidden-dim slices, so the
    hidden grid axis accumulates fc2 partial products into acc_ref (f32).
    """
    j = pl.program_id(1)

    @pl.when(j == 0)
    def _():
        acc_ref[...] = jnp.zeros_like(acc_ref)

    # fc1 slice: (TB, D_in_p) bf16 @ (D_in_p, TH) bf16 -> f32 on the MXU.
    h = jnp.dot(x_ref[...], w1_ref[...], preferred_element_type=jnp.float32)
    # Bias add + ReLU in f32 on the VPU (v5e has no bf16 VPU path).
    h = jnp.maximum(h + b1_ref[...], 0.0)
    # fc2 slice: (TB, TH) @ (TH, D_out_p), accumulate in f32.
    acc_ref[...] += jnp.dot(h.astype(jnp.bfloat16), w2_ref[...],
                            preferred_element_type=jnp.float32)

    @pl.when(j == pl.num_programs(1) - 1)
    def _():
        o_ref[...] = (acc_ref[...] + b2_ref[...]).astype(o_ref.dtype)


def prepare_params(w1, b1, w2, b2, *, vmem_budget=None):
    """One-time weight prep (pad to MXU-friendly multiples + bf16 cast),
    hoisted out of the per-call forward path."""
    if vmem_budget is None:
        vmem_budget = _vmem_budget_bytes()

    w1 = jnp.asarray(w1)
    w2 = jnp.asarray(w2)
    b1 = jnp.asarray(b1).reshape(1, -1)
    b2 = jnp.asarray(b2).reshape(1, -1)

    d_in, h = w1.shape
    d_out = w2.shape[1]

    d_in_p = _round_up(d_in, _LANE)      # K of fc1: keep at 128 (x stream size)
    h_p = _round_up_feature(h)
    d_out_p = _round_up_feature(d_out)

    # Hidden tile: shrink (in 128 steps) until double-buffered weight tiles fit
    # half the VMEM budget.  th == h_p -> weights fully VMEM-resident.
    weight_budget = vmem_budget // 2
    n_h = 1
    th = h_p
    while _weight_tile_bytes(d_in_p, th, d_out_p) > weight_budget and th > 128:
        n_h += 1
        th = _round_up(pl.cdiv(h_p, n_h), 128)
    h_pp = _round_up(h_p, th)

    w1p = jnp.zeros((d_in_p, h_pp), jnp.bfloat16).at[:d_in, :h].set(
        w1.astype(jnp.bfloat16))
    b1p = jnp.zeros((1, h_pp), jnp.float32).at[:, :h].set(b1.astype(jnp.float32))
    w2p = jnp.zeros((h_pp, d_out_p), jnp.bfloat16).at[:h, :d_out].set(
        w2.astype(jnp.bfloat16))
    b2p = jnp.zeros((1, d_out_p), jnp.float32).at[:, :d_out].set(
        b2.astype(jnp.float32))

    return {
        "w1": w1p, "b1": b1p, "w2": w2p, "b2": b2p,
        "dims": (d_in, h, d_out),
        "padded_dims": (d_in_p, h_pp, d_out_p),
        "hidden_tile": th,
        "vmem_budget": vmem_budget,
    }


def simple_mlp_forward(x, params, *, block_b=512, out_dtype=None):
    """x: (B, input_size); params from prepare_params.  Pass
    out_dtype=jnp.bfloat16 to halve the output stream if downstream allows."""
    d_in, h, d_out = params["dims"]
    d_in_p, h_pp, d_out_p = params["padded_dims"]
    th = params["hidden_tile"]
    budget = params["vmem_budget"]

    B = x.shape[0]
    if out_dtype is None:
        out_dtype = x.dtype
    out_itemsize = jnp.dtype(out_dtype).itemsize

    # Balanced batch tile (avoids a ~2x padded last tile for B just over
    # block_b); nudge to a 256 multiple for the v6e/v7x MXU when cheap.
    n_b = max(1, pl.cdiv(B, block_b))
    tb = _round_up(pl.cdiv(B, n_b), _SUBLANE)
    if tb >= 192:
        tb256 = _round_up(tb, 256)
        if _round_up(B, tb256) - B <= tb:
            tb = tb256
    tb = min(tb, _round_up(B, _SUBLANE))
    # Shrink the batch tile until x/out/h tiles fit alongside the weight tiles.
    weight_bytes = _weight_tile_bytes(d_in_p, th, d_out_p)
    while tb > _SUBLANE and (
            weight_bytes
            + _activation_tile_bytes(tb, d_in_p, th, d_out_p, out_itemsize)
            > budget):
        tb = _round_up(tb // 2, _SUBLANE)
    b_p = _round_up(B, tb)

    # Per-call x prep: cast to bf16 (the only recurring per-step HBM stream);
    # pad only when the shape is not already aligned.
    if b_p == B and d_in_p == d_in:
        xp = x.astype(jnp.bfloat16)
    else:
        xp = jnp.zeros((b_p, d_in_p), jnp.bfloat16).at[:B, :d_in].set(
            x.astype(jnp.bfloat16))

    n_b_tiles = b_p // tb
    n_h_tiles = h_pp // th
    grid = (n_b_tiles, n_h_tiles)

    cost = pl.CostEstimate(
        flops=2 * b_p * (d_in_p * h_pp + h_pp * d_out_p),
        transcendentals=0,
        bytes_accessed=(xp.size * 2
                        + (params["w1"].size + params["w2"].size) * 2
                        * (n_b_tiles if n_h_tiles > 1 else 1)
                        + b_p * d_out_p * out_itemsize),
    )

    out_p = pl.pallas_call(
        mlp_kernel,
        out_shape=jax.ShapeDtypeStruct((b_p, d_out_p), out_dtype),
        grid=grid,
        in_specs=[
            # Activation stream: new tile per batch step (double-buffered).
            pl.BlockSpec((tb, d_in_p), lambda i, j: (i, 0)),
            # Weight/bias slices: constant along the batch axis -> loaded once
            # per hidden tile and held in VMEM while the batch streams.
            pl.BlockSpec((d_in_p, th), lambda i, j: (0, j)),
            pl.BlockSpec((1, th), lambda i, j: (0, j)),
            pl.BlockSpec((th, d_out_p), lambda i, j: (j, 0)),
            pl.BlockSpec((1, d_out_p), lambda i, j: (0, 0)),
        ],
        out_specs=pl.BlockSpec((tb, d_out_p), lambda i, j: (i, 0)),
        scratch_shapes=[pltpu.VMEM((tb, d_out_p), jnp.float32)],
        compiler_params=pltpu.CompilerParams(
            # Batch axis independent (megacore / v7x 2-TC sharding); hidden
            # axis is a reduction into the accumulator.
            dimension_semantics=("parallel", "arbitrary"),
            vmem_limit_bytes=int(budget),
        ),
        cost_estimate=cost,
    )(xp, params["w1"], params["b1"], params["w2"], params["b2"])

    if b_p != B or d_out_p != d_out:
        return out_p[:B, :d_out]
    return out_p


def init_params(key, input_size, hidden_size, output_size, dtype=jnp.float32):
    # Deterministic init mimicking nn.Linear's U(-1/sqrt(fan_in), 1/sqrt(fan_in)).
    k1, k2, k3, k4 = jax.random.split(key, 4)
    bound1 = 1.0 / jnp.sqrt(input_size)
    bound2 = 1.0 / jnp.sqrt(hidden_size)
    w1 = jax.random.uniform(k1, (input_size, hidden_size), dtype, -bound1, bound1)
    b1 = jax.random.uniform(k2, (1, hidden_size), dtype, -bound1, bound1)
    w2 = jax.random.uniform(k3, (hidden_size, output_size), dtype, -bound2, bound2)
    b2 = jax.random.uniform(k4, (1, output_size), dtype, -bound2, bound2)
    return w1, b1, w2, b2


if __name__ == "__main__":
    key = jax.random.PRNGKey(0)
    kx, kp = jax.random.split(key)

    B, input_size, hidden_size, output_size = 8, 32, 64, 16
    x = jax.random.normal(kx, (B, input_size), jnp.float32)
    w1, b1, w2, b2 = init_params(kp, input_size, hidden_size, output_size)

    # One-time weight prep (padding + bf16 cast hoisted out of the forward).
    params = prepare_params(w1, b1, w2, b2)

    out = simple_mlp_forward(x, params)
    out = jax.block_until_ready(out)
    assert out.shape == (B, output_size)

    # f32 reference (same math as the PyTorch module); bf16 MXU operands with
    # f32 accumulation -> loosened tolerance.
    ref_f32 = jnp.maximum(x @ w1 + b1, 0.0) @ w2 + b2
    assert jnp.allclose(out, ref_f32, atol=5e-2, rtol=5e-2)

    # Reference mimicking the kernel's bf16-operand / f32-accumulate numerics.
    h_ref = jnp.maximum(
        jnp.dot(x.astype(jnp.bfloat16), w1.astype(jnp.bfloat16),
                preferred_element_type=jnp.float32) + b1, 0.0)
    ref_bf16 = jnp.dot(h_ref.astype(jnp.bfloat16), w2.astype(jnp.bfloat16),
                       preferred_element_type=jnp.float32) + b2
    assert jnp.allclose(out, ref_bf16, atol=1e-3, rtol=1e-3)

    print("KERNEL_OK")
</pallas_src>

<mosaic_0001>
module attributes {stable_mosaic.version = 11 : i64} {
  func.func @mlp_kernel(%arg0: i32, %arg1: i32, %arg2: memref<8x128xbf16, #tpu.memory_space<vmem>>, %arg3: memref<128x128xbf16, #tpu.memory_space<vmem>>, %arg4: memref<1x128xf32, #tpu.memory_space<vmem>>, %arg5: memref<128x128xbf16, #tpu.memory_space<vmem>>, %arg6: memref<1x128xf32, #tpu.memory_space<vmem>>, %arg7: memref<8x128xf32, #tpu.memory_space<vmem>>, %arg8: memref<8x128xf32, #tpu.memory_space<vmem>>) attributes {dimension_semantics = [#tpu.dimension_semantics<parallel>, #tpu.dimension_semantics<arbitrary>], iteration_bounds = array<i64: 1, 1>, scalar_prefetch = 0 : i64, scratch_operands = 1 : i64, tpu.core_type = #tpu.core_type<tc>, window_params = [{transform_indices = @transform_0, window_bounds = array<i64: 8, 128>}, {transform_indices = @transform_1, window_bounds = array<i64: 128, 128>}, {transform_indices = @transform_2, window_bounds = array<i64: 1, 128>}, {transform_indices = @transform_3, window_bounds = array<i64: 128, 128>}, {pipeline_mode = #tpu.pipeline_mode<synchronous>, transform_indices = @transform_4, window_bounds = array<i64: 1, 128>}, {transform_indices = @transform_5, window_bounds = array<i64: 8, 128>}]} {
    %c0_i32 = arith.constant 0 : i32
    %0 = arith.cmpi eq, %arg1, %c0_i32 : i32
    %1 = arith.extui %0 : i1 to i32
    %c0_i32_0 = arith.constant 0 : i32
    %2 = arith.cmpi ne, %1, %c0_i32_0 : i32
    scf.if %2 {
      %cst_16 = arith.constant 0.000000e+00 : f32
      %20 = vector.broadcast %cst_16 : f32 to vector<8x128xf32>
      %c0_17 = arith.constant 0 : index
      %c0_18 = arith.constant 0 : index
      %21 = vector.load %arg8[%c0_17, %c0_18] : memref<8x128xf32, #tpu.memory_space<vmem>>, vector<8x128xf32>
      tpu.vector_store %arg8[%c0_17, %c0_18], %20 {strides = array<i32>} : memref<8x128xf32, #tpu.memory_space<vmem>>, vector<8x128xf32>,
    } else {
    }
    %c0 = arith.constant 0 : index
    %c0_1 = arith.constant 0 : index
    %3 = vector.load %arg2[%c0, %c0_1] : memref<8x128xbf16, #tpu.memory_space<vmem>>, vector<8x128xbf16>
    %c0_2 = arith.constant 0 : index
    %c0_3 = arith.constant 0 : index
    %4 = vector.load %arg3[%c0_2, %c0_3] : memref<128x128xbf16, #tpu.memory_space<vmem>>, vector<128x128xbf16>
    %cst = arith.constant dense<0.000000e+00> : vector<8x128xf32>
    %5 = tpu.matmul %3, %4, %cst {dimension_numbers = #tpu.dot_dimension_numbers<[1], [0], [0], [1], [0, 0, 1, 1], [], []>} : vector<8x128xbf16>, vector<128x128xbf16>, vector<8x128xf32> -> vector<8x128xf32>
    %c0_4 = arith.constant 0 : index
    %c0_5 = arith.constant 0 : index
    %6 = vector.load %arg4[%c0_4, %c0_5] : memref<1x128xf32, #tpu.memory_space<vmem>>, vector<1x128xf32>
    %7 = vector.broadcast %6 : vector<1x128xf32> to vector<8x128xf32>
    %8 = arith.addf %5, %7 : vector<8x128xf32>
    %cst_6 = arith.constant 0.000000e+00 : f32
    %9 = vector.broadcast %cst_6 : f32 to vector<8x128xf32>
    %10 = arith.maximumf %8, %9 : vector<8x128xf32>
    %c0_7 = arith.constant 0 : index
    %c0_8 = arith.constant 0 : index
    %11 = vector.load %arg8[%c0_7, %c0_8] : memref<8x128xf32, #tpu.memory_space<vmem>>, vector<8x128xf32>
    %12 = arith.truncf %10 : vector<8x128xf32> to vector<8x128xbf16>
    %c0_9 = arith.constant 0 : index
    %c0_10 = arith.constant 0 : index
    %13 = vector.load %arg5[%c0_9, %c0_10] : memref<128x128xbf16, #tpu.memory_space<vmem>>, vector<128x128xbf16>
    %cst_11 = arith.constant dense<0.000000e+00> : vector<8x128xf32>
    %14 = tpu.matmul %12, %13, %cst_11 {dimension_numbers = #tpu.dot_dimension_numbers<[1], [0], [0], [1], [0, 0, 1, 1], [], []>} : vector<8x128xbf16>, vector<128x128xbf16>, vector<8x128xf32> -> vector<8x128xf32>
    %15 = arith.addf %11, %14 : vector<8x128xf32>
    %c0_12 = arith.constant 0 : index
    %c0_13 = arith.constant 0 : index
    %16 = vector.load %arg8[%c0_12, %c0_13] : memref<8x128xf32, #tpu.memory_space<vmem>>, vector<8x128xf32>
    tpu.vector_store %arg8[%c0_12, %c0_13], %15 {strides = array<i32>} : memref<8x128xf32, #tpu.memory_space<vmem>>, vector<8x128xf32>,
    %c0_i32_14 = arith.constant 0 : i32
    %17 = arith.cmpi eq, %arg1, %c0_i32_14 : i32
    %18 = arith.extui %17 : i1 to i32
    %c0_i32_15 = arith.constant 0 : i32
    %19 = arith.cmpi ne, %18, %c0_i32_15 : i32
    scf.if %19 {
      %c0_16 = arith.constant 0 : index
      %c0_17 = arith.constant 0 : index
      %20 = vector.load %arg8[%c0_16, %c0_17] : memref<8x128xf32, #tpu.memory_space<vmem>>, vector<8x128xf32>
      %c0_18 = arith.constant 0 : index
      %c0_19 = arith.constant 0 : index
      %21 = vector.load %arg6[%c0_18, %c0_19] : memref<1x128xf32, #tpu.memory_space<vmem>>, vector<1x128xf32>
      %22 = vector.broadcast %21 : vector<1x128xf32> to vector<8x128xf32>
      %23 = arith.addf %20, %22 : vector<8x128xf32>
      %c0_20 = arith.constant 0 : index
      %c0_21 = arith.constant 0 : index
      %24 = vector.load %arg7[%c0_20, %c0_21] : memref<8x128xf32, #tpu.memory_space<vmem>>, vector<8x128xf32>
      tpu.vector_store %arg7[%c0_20, %c0_21], %23 {strides = array<i32>} : memref<8x128xf32, #tpu.memory_space<vmem>>, vector<8x128xf32>,
    } else {
    }
    return
  }
  func.func @transform_0(%arg0: i32, %arg1: i32) -> (i32, i32) {
    %c0_i32 = arith.constant 0 : i32
    %c0_i32_0 = arith.constant 0 : i32
    return %arg0, %c0_i32 : i32, i32
  }
  func.func @transform_1(%arg0: i32, %arg1: i32) -> (i32, i32) {
    %c0_i32 = arith.constant 0 : i32
    %c0_i32_0 = arith.constant 0 : i32
    return %c0_i32, %arg1 : i32, i32
  }
  func.func @transform_2(%arg0: i32, %arg1: i32) -> (i32, i32) {
    %c0_i32 = arith.constant 0 : i32
    %c0_i32_0 = arith.constant 0 : i32
    return %c0_i32, %arg1 : i32, i32
  }
  func.func @transform_3(%arg0: i32, %arg1: i32) -> (i32, i32) {
    %c0_i32 = arith.constant 0 : i32
    %c0_i32_0 = arith.constant 0 : i32
    return %arg1, %c0_i32 : i32, i32
  }
  func.func @transform_4(%arg0: i32, %arg1: i32) -> (i32, i32) {
    %c0_i32 = arith.constant 0 : i32
    %c0_i32_0 = arith.constant 0 : i32
    %c0_i32_1 = arith.constant 0 : i32
    return %c0_i32, %c0_i32_0 : i32, i32
  }
  func.func @transform_5(%arg0: i32, %arg1: i32) -> (i32, i32) {
    %c0_i32 = arith.constant 0 : i32
    %c0_i32_0 = arith.constant 0 : i32
    return %arg0, %c0_i32 : i32, i32
  }
}

</mosaic_0001>

<bundles_post_ra>
// kernel: tpu_custom_call.1
= control target key start
LH: loop header
LB: loop body
LE: loop exit
PB: predicated region body
PF: predicated region fallthrough
CT: control target
= control target key end

     0   :  { %10 = vsyncpa [#allocation4], 0  ;;  %s608_s0 = inlined_call_operand.hbm [shape: bf16[8,128], index: 0, kind: input, shape index: {}]   ;;  %s609_s1 = inlined_call_operand.hbm [shape: bf16[128,128], index: 1, kind: input, shape index: {}]   ;;  %s610_s2 = inlined_call_operand.vmem [shape: f32[1,128], index: 2, kind: input, shape index: {}]   ;;  %s611_s3 = inlined_call_operand.hbm [shape: bf16[128,128], index: 3, kind: input, shape index: {}]   ;;  %s612_s4 = inlined_call_operand.vmem [shape: f32[1,128], index: 4, kind: input, shape index: {}]   ;;  %s613_s5 = inlined_call_operand.hbm [shape: f32[8,128], index: 5, kind: output, shape index: {}]  }
   0x1   :  { %11 = vsyncpa [#allocation7], 0 }
   0x2   :  { %12 = vsyncpa [#allocation5], 0  ;;  %s510_s18 = smov [#allocation6]   ;;  %s416_s22 = scalar_lea.hbm %s609_s1, 1024 }
   0x3   :  { %s28_s19 = sshll.u32 %s510_s18, 4  ;;  %p417_p0 = scmp.ne.s32.totalorder %s609_s1, %s416_s22  ;;  %s29_s19 = int_to_ptr.vmem [resolvable:$true] %s28_s19 }
   0x4   :  { %p420_p1 = scmp.lt.u32.totalorder %s416_s22, %s609_s1 }
   0x6   :  { %p422_p2 = pnand %p420_p1, %p417_p0 }
   0x8   :  { %425 = shalt.err (!%p422_p2)
}
   0x9   :  { %s426_s27 = scalar_lea.vmem %s29_s19, 1024  ;;  %p431_p4 = scmp.lt.s32.totalorder %s29_s19, %s29_s19 }
   0xa   :  { %p427_p3 = scmp.ne.s32.totalorder %s29_s19, %s426_s27  ;;  %p432_p5 = scmp.lt.s32.totalorder %s426_s27, %s426_s27 }
   0xc   :  { %p433_p6 = por %p432_p5, %p431_p4 }
   0xe   :  { %p434_p7 = pnand %p433_p6, %p427_p3 }
  0x10   :  { %437 = shalt.err (!%p434_p7)
}
  0x11   :  { %s511_s28 = smov 64   ;;  %s512_s29 = smov 4  }
  0x12   :  { %34 = dma.hbm_to_vmem [thread:$0]  %s609_s1, 1024, %s29_s19, [#allocation7], %s511_s28, %s511_s28, %s512_s29  }
  0x13   :  { %s513_s7 = smov [#allocation3]   ;;  %s514_s9 = smov [#allocation8]  }
  0x14   :  { %s19_s8 = sshll.u32 %s513_s7, 4  ;;  %s42_s10 = sshll.u32 %s514_s9, 4  ;;  %s20_s8 = int_to_ptr.vmem [resolvable:$true] %s19_s8  ;;  %s43_s10 = int_to_ptr.vmem [resolvable:$true] %s42_s10 }
  0x15   :  { %s438_s13 = scalar_lea.hbm %s608_s0, 64 }
  0x16   :  { %p439_p8 = scmp.ne.s32.totalorder %s608_s0, %s438_s13  ;;  %p442_p9 = scmp.lt.u32.totalorder %s438_s13, %s608_s0 }
  0x18   :  { %p444_p10 = pnand %p442_p9, %p439_p8 }
  0x1a   :  { %447 = shalt.err (!%p444_p10)
}
  0x1b   :  { %s448_s1 = scalar_lea.vmem %s20_s8, 64  ;;  %p453_p12 = scmp.lt.s32.totalorder %s20_s8, %s20_s8 }
  0x1c   :  { %p449_p11 = scmp.ne.s32.totalorder %s20_s8, %s448_s1  ;;  %p454_p13 = scmp.lt.s32.totalorder %s448_s1, %s448_s1 }
  0x1e   :  { %p455_p0 = por %p454_p13, %p453_p12 }
  0x20   :  { %p456_p1 = pnand %p455_p0, %p449_p11 }
  0x22   :  { %459 = shalt.err (!%p456_p1)
}
  0x23   :  { %22 = dma.hbm_to_vmem [thread:$0]  %s608_s0, 64, %s20_s8, [#allocation4]  }
  0x24   :  { %s460_s22 = scalar_lea.hbm %s611_s3, 1024 }
  0x25   :  { %p461_p2 = scmp.ne.s32.totalorder %s611_s3, %s460_s22  ;;  %p464_p3 = scmp.lt.u32.totalorder %s460_s22, %s611_s3 }
  0x27   :  { %p466_p4 = pnand %p464_p3, %p461_p2 }
  0x29   :  { %469 = shalt.err (!%p466_p4)
}
  0x2a   :  { %s470_s27 = scalar_lea.vmem %s43_s10, 1024  ;;  %p475_p6 = scmp.lt.s32.totalorder %s43_s10, %s43_s10 }
  0x2b   :  { %p471_p5 = scmp.ne.s32.totalorder %s43_s10, %s470_s27  ;;  %p476_p7 = scmp.lt.s32.totalorder %s470_s27, %s470_s27 }
  0x2d   :  { %p477_p8 = por %p476_p7, %p475_p6 }
  0x2f   :  { %p478_p9 = pnand %p477_p8, %p471_p5 }
  0x31   :  { %481 = shalt.err (!%p478_p9)
}
  0x32   :  { %48 = dma.hbm_to_vmem [thread:$0]  %s611_s3, 1024, %s43_s10, [#allocation7], %s511_s28, %s511_s28, %s512_s29  }
  0x33   :  { %504 = dma.done.wait [#allocation4], 64  }
  0x34   :  { %505 = vsyncadd [#allocation4], 4294967232 }
  0x35   :  { %506 = dma.done.wait [#allocation7], 2048  }
  0x36   :  { %507 = vsyncadd [#allocation7], 4294965248  ;;  %v515_v0 = vmov 0.0   ;;  %vm516_vm0 = vmmov 0   ;;  %v400_v1 = vld [vmem:[#allocation6] sm:$0xff]   ;;  %v401_v2 = vld [vmem:[#allocation6 + $0x8] sm:$0xff]  }
  0x37   :  { %352 = vmatprep.subr.bf16.mxu0 %v515_v0  ;;  %368 = vmatprep.mubr.msk.bf16.mxu0 %vm516_vm0, %v515_v0  ;;  %v402_v3 = vld [vmem:[#allocation6 + $0x10] sm:$0xff]   ;;  %v408_v4 = vld [vmem:[#allocation8] sm:$0xff]   ;;  %v403_v5 = vld [vmem:[#allocation6 + $0x18] sm:$0xff]   ;;  %s517_s7 = smov [#allocation9]  }
  0x38   :  { %372 = vmatprep.subr.bf16.mxu1 %v515_v0  ;;  %388 = vmatprep.mubr.msk.bf16.mxu1 %vm516_vm0, %v515_v0  ;;  %v409_v6 = vld [vmem:[#allocation8 + $0x8] sm:$0xff]   ;;  %v404_v7 = vld [vmem:[#allocation6 + $0x20] sm:$0xff]   ;;  %v410_v8 = vld [vmem:[#allocation8 + $0x10] sm:$0xff]   ;;  %s306_s8 = sshll.u32 %s517_s7, 4  ;;  %s307_s8 = int_to_ptr.vmem [resolvable:$true] %s306_s8 }
  0x39   :  { %353 = vmatpush3.bf16.msra.mxu0 %v400_v1  ;;  %373 = vmatpush3.bf16.msra.mxu1 %v408_v4  ;;  %v405_v9 = vld [vmem:[#allocation6 + $0x28] sm:$0xff]   ;;  %v411_v10 = vld [vmem:[#allocation8 + $0x18] sm:$0xff]   ;;  %v406_v11 = vld [vmem:[#allocation6 + $0x30] sm:$0xff]   ;;  %p487_p11 = scmp.lt.s32.totalorder %s307_s8, %s307_s8 }
  0x3a   :  { %354 = vmatprep.subr.bf16.mxu0 %v515_v0  ;;  %374 = vmatprep.subr.bf16.mxu1 %v515_v0  ;;  %v412_v12 = vld [vmem:[#allocation8 + $0x20] sm:$0xff]   ;;  %v407_v13 = vld [vmem:[#allocation6 + $0x38] sm:$0xff]   ;;  %v413_v14 = vld [vmem:[#allocation8 + $0x28] sm:$0xff]  }
  0x3b   :  { %v66_v15 = vld [vmem:[#allocation3] sm:$0xf]  ;;  %v414_v16 = vld [vmem:[#allocation8 + $0x30] sm:$0xff]  }
  0x3c   :  { %v415_v17 = vld [vmem:[#allocation8 + $0x38] sm:$0xff]  }
  0x3d   :  { %355 = vmatpush3.bf16.msra.mxu0 %v401_v2  ;;  %375 = vmatpush3.bf16.msra.mxu1 %v409_v6  ;;  %v316_v18 = vld [vmem:[%s610_s2] ss:$0 sm:$0xff]  ;;  %s482_s2 = scalar_lea.vmem %s307_s8, 128 }
  0x3e   :  { %356 = vmatprep.subr.bf16.mxu0 %v515_v0  ;;  %376 = vmatprep.subr.bf16.mxu1 %v515_v0  ;;  %v333_v26 = vld [vmem:[%s612_s4] ss:$0 sm:$0xff]  ;;  %p483_p10 = scmp.ne.s32.totalorder %s307_s8, %s482_s2  ;;  %p488_p12 = scmp.lt.s32.totalorder %s482_s2, %s482_s2 }
  0x40   :  { %p489_p13 = por %p488_p12, %p487_p11 }
  0x41   :  { %357 = vmatpush3.bf16.msra.mxu0 %v402_v3  ;;  %377 = vmatpush3.bf16.msra.mxu1 %v410_v8 }
  0x42   :  { %358 = vmatprep.subr.bf16.mxu0 %v515_v0  ;;  %378 = vmatprep.subr.bf16.mxu1 %v515_v0  ;;  %p490_p0 = pnand %p489_p13, %p483_p10 }
  0x45   :  { %359 = vmatpush3.bf16.msra.mxu0 %v403_v5  ;;  %379 = vmatpush3.bf16.msra.mxu1 %v411_v10 }
  0x46   :  { %360 = vmatprep.subr.bf16.mxu0 %v515_v0  ;;  %380 = vmatprep.subr.bf16.mxu1 %v515_v0 }
  0x49   :  { %361 = vmatpush3.bf16.msra.mxu0 %v404_v7  ;;  %381 = vmatpush3.bf16.msra.mxu1 %v412_v12 }
  0x4a   :  { %362 = vmatprep.subr.bf16.mxu0 %v515_v0  ;;  %382 = vmatprep.subr.bf16.mxu1 %v515_v0 }
  0x4d   :  { %363 = vmatpush3.bf16.msra.mxu0 %v405_v9  ;;  %383 = vmatpush3.bf16.msra.mxu1 %v413_v14 }
  0x4e   :  { %364 = vmatprep.subr.bf16.mxu0 %v515_v0  ;;  %384 = vmatprep.subr.bf16.mxu1 %v515_v0 }
  0x51   :  { %365 = vmatpush3.bf16.msra.mxu0 %v406_v11  ;;  %385 = vmatpush3.bf16.msra.mxu1 %v414_v16 }
  0x52   :  { %366 = vmatprep.subr.bf16.mxu0 %v515_v0  ;;  %386 = vmatprep.subr.bf16.mxu1 %v515_v0 }
  0x55   :  { %367 = vmatpush3.bf16.msra.mxu0 %v407_v13  ;;  %387 = vmatpush3.bf16.msra.mxu1 %v415_v17 }
  0x58   :  { %369 = vmatmul.mubr.bf16.vlgmr.msra.gmra.mrb[0].mxu0 %v66_v15 }
 0x12b   :  { %v172_v19 = vpop.f32.mrb[0].mxu0 }
 0x12c   :  { %v173_v20 = vadd.f32 %v316_v18, %v172_v19  ;;  %v370_v21 = vpop.f32.mrb[1].mxu0 }
 0x12d   :  { %v175_v22 = vpop.f32.mrb[2].mxu0 }
 0x12e   :  { %v178_v23 = vmax.f32 %v173_v20, 0.0  ;;  %v371_v24 = vpop.f32.mrb[3].mxu0 }
 0x130   :  { %v180_v25 = vpack.c.bf16 %v178_v23, %v178_v23 }
 0x132   :  { %389 = vmatmul.mubr.bf16.vlgmr.msra.gmra.mrb[0].mxu1 %v180_v25 }
 0x205   :  { %v279_v27 = vpop.f32.mrb[0].mxu1 }
 0x206   :  { %v298_v28 = vadd.f32 %v333_v26, %v279_v27  ;;  %v390_v29 = vpop.f32.mrb[1].mxu1 }
 0x207   :  { %v282_v30 = vpop.f32.mrb[2].mxu1 }
 0x208   :  { %299 = vst [vmem:[#allocation9] sm:$0xff] %v298_v28  ;;  %v391_v31 = vpop.f32.mrb[3].mxu1 }
 0x209   :  { %493 = shalt.err (!%p490_p0)
}
 0x20a   :  { %s494_s4 = scalar_lea.hbm %s613_s5, 128 }
 0x20b   :  { %p495_p1 = scmp.ne.s32.totalorder %s613_s5, %s494_s4  ;;  %p498_p2 = scmp.lt.u32.totalorder %s494_s4, %s613_s5 }
 0x20d   :  { %p500_p3 = pnand %p498_p2, %p495_p1 }
 0x20f   :  { %503 = shalt.err (!%p500_p3)
}
 0x210   :  { %309 = dma.vmem_to_hbm [thread:$0]  %s307_s8, 128, %s613_s5, [#allocation5]  }
 0x211   :  { %508 = dma.done.wait [#allocation5], 128  }
 0x212   :  { %509 = vsyncadd [#allocation5], 4294967168 }
 0x213   :  { %313 = vsyncpa [#allocation4], 1 }
 0x214   :  { %314 = vsyncpa [#allocation7], 1 }
 0x215   :  { %315 = vsyncpa [#allocation5], 1 }

</bundles_post_ra>
